<compile_context>
chip_gen: v5e
topology: v5e:2x2
jax: 0.10.0
libtpu: 0.0.40
codegen_flags: <defaults>
</compile_context>

<pallas_src>
import math

import jax
import jax.numpy as jnp
from jax.experimental import pallas as pl
from jax.experimental.pallas import tpu as pltpu


def mlp_kernel(x_ref,
               w1_ref, b1_ref,
               w2_ref, b2_ref,
               w3_ref, b3_ref,
               w4_ref, b4_ref,
               o_ref):
    """Fused 4-layer MLP forward on one batch tile.

    x/weights are bf16 (MXU fast path); biases, accumulation, activations and
    the output are f32.
    """
    x = x_ref[...]                       # (TB, in_dim) bf16

    # Hoist bias loads once per grid step.
    b1 = b1_ref[...]
    b2 = b2_ref[...]
    b3 = b3_ref[...]
    b4 = b4_ref[...]

    # layer_1 + ReLU
    h = jnp.dot(x, w1_ref[...], preferred_element_type=jnp.float32) + b1
    h = jnp.maximum(h, 0.0)

    # layer_2 + ReLU
    h = jnp.dot(h.astype(jnp.bfloat16), w2_ref[...],
                preferred_element_type=jnp.float32) + b2
    h = jnp.maximum(h, 0.0)

    # Dropout(0.4): identity in eval mode.
    # TODO(synk): training-mode dropout (pltpu PRNG mask + 1/(1-p) scaling) not emitted.

    # layer_3 + LeakyReLU (default negative_slope = 0.01)
    z = jnp.dot(h.astype(jnp.bfloat16), w3_ref[...],
                preferred_element_type=jnp.float32) + b3
    h = jnp.where(z >= 0.0, z, 0.01 * z)

    # output_layer (padded to 128 lanes) + Sigmoid (exact).
    z = jnp.dot(h.astype(jnp.bfloat16), w4_ref[...],
                preferred_element_type=jnp.float32) + b4
    o_ref[...] = 1.0 / (1.0 + jnp.exp(-z))


def mlp_forward(x, params, *, block_batch=512):
    """params: list of (W, b) with W shaped (in_features, out_features), f32."""
    (w1, b1), (w2, b2), (w3, b3), (w4, b4) = params
    batch, in_dim = x.shape
    out_dim = w4.shape[1]

    # ---- lane-dense output: pad the final layer to 128 output lanes ----
    out_pad = 128
    w4p = jnp.zeros((w4.shape[0], out_pad), w4.dtype).at[:, :out_dim].set(w4)
    b4p = jnp.zeros((1, out_pad), b4.dtype).at[:, :out_dim].set(b4)

    # ---- batch tiling: multiple of 8 sublanes, capped at block_batch ----
    tb = min(block_batch, max(8, ((batch + 7) // 8) * 8))
    padded_batch = ((batch + tb - 1) // tb) * tb
    if padded_batch != batch:
        x = jnp.pad(x, ((0, padded_batch - batch), (0, 0)))
    grid = (padded_batch // tb,)

    # ---- bf16 inputs/weights to the MXU; f32 everywhere else ----
    xb = x.astype(jnp.bfloat16)
    w1b = w1.astype(jnp.bfloat16)
    w2b = w2.astype(jnp.bfloat16)
    w3b = w3.astype(jnp.bfloat16)
    w4b = w4p.astype(jnp.bfloat16)

    # Weights/biases stay VMEM-resident across grid steps (constant index_map).
    const = lambda shape: pl.BlockSpec(shape, lambda i: (0, 0))

    out = pl.pallas_call(
        mlp_kernel,
        out_shape=jax.ShapeDtypeStruct((padded_batch, out_pad), jnp.float32),
        grid=grid,
        in_specs=[
            pl.BlockSpec((tb, in_dim), lambda i: (i, 0)),
            const(w1b.shape), const(b1.shape),
            const(w2b.shape), const(b2.shape),
            const(w3b.shape), const(b3.shape),
            const(w4b.shape), const(b4p.shape),
        ],
        out_specs=pl.BlockSpec((tb, out_pad), lambda i: (i, 0)),
        compiler_params=pltpu.CompilerParams(
            dimension_semantics=("parallel",)),
    )(xb, w1b, b1, w2b, b2, w3b, b3, w4b, b4p)

    return out[:batch, :out_dim]


def init_linear(key, fan_in, fan_out, kaiming_relu=True):
    """Deterministic init mimicking the PyTorch module's initializers.

    Weight returned already transposed to (fan_in, fan_out)."""
    kw, kb = jax.random.split(key)
    if kaiming_relu:
        # kaiming_uniform_(nonlinearity='relu'): bound = sqrt(2) * sqrt(3 / fan_in)
        w_bound = math.sqrt(6.0 / fan_in)
    else:
        # default nn.Linear weight init (kaiming_uniform a=sqrt(5)) -> 1/sqrt(fan_in)
        w_bound = 1.0 / math.sqrt(fan_in)
    b_bound = 1.0 / math.sqrt(fan_in)
    w = jax.random.uniform(kw, (fan_in, fan_out), jnp.float32, -w_bound, w_bound)
    b = jax.random.uniform(kb, (1, fan_out), jnp.float32, -b_bound, b_bound)
    return w, b


def ref_forward(x, params):
    """Pure-JAX reference mirroring the kernel's bf16-in / f32-accumulate math."""
    (w1, b1), (w2, b2), (w3, b3), (w4, b4) = params
    bf = lambda a: a.astype(jnp.bfloat16)
    h = jnp.dot(bf(x), bf(w1), preferred_element_type=jnp.float32) + b1
    h = jnp.maximum(h, 0.0)
    h = jnp.dot(bf(h), bf(w2), preferred_element_type=jnp.float32) + b2
    h = jnp.maximum(h, 0.0)
    z = jnp.dot(bf(h), bf(w3), preferred_element_type=jnp.float32) + b3
    h = jnp.where(z >= 0.0, z, 0.01 * z)
    z = jnp.dot(bf(h), bf(w4), preferred_element_type=jnp.float32) + b4
    return 1.0 / (1.0 + jnp.exp(-z))


if __name__ == "__main__":
    # Small shapes implied by the module: x is (batch, input_dim).
    # batch=50 with a 16-row tile exercises multi-step tiling + batch padding.
    batch, input_dim, hidden_dim, output_dim = 50, 16, 32, 4

    key = jax.random.PRNGKey(0)
    k_x, k1, k2, k3, k4 = jax.random.split(key, 5)

    x = jax.random.normal(k_x, (batch, input_dim), jnp.float32)

    params = [
        init_linear(k1, input_dim, hidden_dim * 2, kaiming_relu=True),    # layer_1
        init_linear(k2, hidden_dim * 2, hidden_dim, kaiming_relu=True),   # layer_2
        init_linear(k3, hidden_dim, hidden_dim // 2, kaiming_relu=True),  # layer_3
        init_linear(k4, hidden_dim // 2, output_dim, kaiming_relu=False), # output_layer
    ]

    out = mlp_forward(x, params, block_batch=16)
    out = jax.block_until_ready(out)

    ref = ref_forward(x, params)
    assert out.shape == (batch, output_dim)
    err = float(jnp.max(jnp.abs(out - ref)))
    assert jnp.allclose(out, ref, atol=2e-3), err

    print("KERNEL_OK")
</pallas_src>

<mosaic_0001>
module attributes {stable_mosaic.version = 11 : i64} {
  func.func @mlp_kernel(%arg0: i32, %arg1: memref<16x16xbf16, #tpu.memory_space<vmem>>, %arg2: memref<16x64xbf16, #tpu.memory_space<vmem>>, %arg3: memref<1x64xf32, #tpu.memory_space<vmem>>, %arg4: memref<64x32xbf16, #tpu.memory_space<vmem>>, %arg5: memref<1x32xf32, #tpu.memory_space<vmem>>, %arg6: memref<32x16xbf16, #tpu.memory_space<vmem>>, %arg7: memref<1x16xf32, #tpu.memory_space<vmem>>, %arg8: memref<16x128xbf16, #tpu.memory_space<vmem>>, %arg9: memref<1x128xf32, #tpu.memory_space<vmem>>, %arg10: memref<16x128xf32, #tpu.memory_space<vmem>>) attributes {dimension_semantics = [#tpu.dimension_semantics<parallel>], iteration_bounds = array<i64: 4>, scalar_prefetch = 0 : i64, scratch_operands = 0 : i64, tpu.core_type = #tpu.core_type<tc>, window_params = [{transform_indices = @transform_0, window_bounds = array<i64: 16, 16>}, {pipeline_mode = #tpu.pipeline_mode<synchronous>, transform_indices = @transform_1, window_bounds = array<i64: 16, 64>}, {pipeline_mode = #tpu.pipeline_mode<synchronous>, transform_indices = @transform_2, window_bounds = array<i64: 1, 64>}, {pipeline_mode = #tpu.pipeline_mode<synchronous>, transform_indices = @transform_3, window_bounds = array<i64: 64, 32>}, {pipeline_mode = #tpu.pipeline_mode<synchronous>, transform_indices = @transform_4, window_bounds = array<i64: 1, 32>}, {pipeline_mode = #tpu.pipeline_mode<synchronous>, transform_indices = @transform_5, window_bounds = array<i64: 32, 16>}, {pipeline_mode = #tpu.pipeline_mode<synchronous>, transform_indices = @transform_6, window_bounds = array<i64: 1, 16>}, {pipeline_mode = #tpu.pipeline_mode<synchronous>, transform_indices = @transform_7, window_bounds = array<i64: 16, 128>}, {pipeline_mode = #tpu.pipeline_mode<synchronous>, transform_indices = @transform_8, window_bounds = array<i64: 1, 128>}, {transform_indices = @transform_9, window_bounds = array<i64: 16, 128>}]} {
    %c0 = arith.constant 0 : index
    %c0_0 = arith.constant 0 : index
    %0 = vector.load %arg1[%c0, %c0_0] : memref<16x16xbf16, #tpu.memory_space<vmem>>, vector<16x16xbf16>
    %c0_1 = arith.constant 0 : index
    %c0_2 = arith.constant 0 : index
    %1 = vector.load %arg3[%c0_1, %c0_2] : memref<1x64xf32, #tpu.memory_space<vmem>>, vector<1x64xf32>
    %c0_3 = arith.constant 0 : index
    %c0_4 = arith.constant 0 : index
    %2 = vector.load %arg5[%c0_3, %c0_4] : memref<1x32xf32, #tpu.memory_space<vmem>>, vector<1x32xf32>
    %c0_5 = arith.constant 0 : index
    %c0_6 = arith.constant 0 : index
    %3 = vector.load %arg7[%c0_5, %c0_6] : memref<1x16xf32, #tpu.memory_space<vmem>>, vector<1x16xf32>
    %c0_7 = arith.constant 0 : index
    %c0_8 = arith.constant 0 : index
    %4 = vector.load %arg9[%c0_7, %c0_8] : memref<1x128xf32, #tpu.memory_space<vmem>>, vector<1x128xf32>
    %c0_9 = arith.constant 0 : index
    %c0_10 = arith.constant 0 : index
    %5 = vector.load %arg2[%c0_9, %c0_10] : memref<16x64xbf16, #tpu.memory_space<vmem>>, vector<16x64xbf16>
    %cst = arith.constant dense<0.000000e+00> : vector<16x64xf32>
    %6 = tpu.matmul %0, %5, %cst {dimension_numbers = #tpu.dot_dimension_numbers<[1], [0], [0], [1], [0, 0, 1, 1], [], []>} : vector<16x16xbf16>, vector<16x64xbf16>, vector<16x64xf32> -> vector<16x64xf32>
    %7 = vector.broadcast %1 : vector<1x64xf32> to vector<16x64xf32>
    %8 = arith.addf %6, %7 : vector<16x64xf32>
    %cst_11 = arith.constant 0.000000e+00 : f32
    %9 = vector.broadcast %cst_11 : f32 to vector<16x64xf32>
    %10 = arith.maximumf %8, %9 : vector<16x64xf32>
    %11 = arith.truncf %10 : vector<16x64xf32> to vector<16x64xbf16>
    %c0_12 = arith.constant 0 : index
    %c0_13 = arith.constant 0 : index
    %12 = vector.load %arg4[%c0_12, %c0_13] : memref<64x32xbf16, #tpu.memory_space<vmem>>, vector<64x32xbf16>
    %cst_14 = arith.constant dense<0.000000e+00> : vector<16x32xf32>
    %13 = tpu.matmul %11, %12, %cst_14 {dimension_numbers = #tpu.dot_dimension_numbers<[1], [0], [0], [1], [0, 0, 1, 1], [], []>} : vector<16x64xbf16>, vector<64x32xbf16>, vector<16x32xf32> -> vector<16x32xf32>
    %14 = vector.broadcast %2 : vector<1x32xf32> to vector<16x32xf32>
    %15 = arith.addf %13, %14 : vector<16x32xf32>
    %cst_15 = arith.constant 0.000000e+00 : f32
    %16 = vector.broadcast %cst_15 : f32 to vector<16x32xf32>
    %17 = arith.maximumf %15, %16 : vector<16x32xf32>
    %18 = arith.truncf %17 : vector<16x32xf32> to vector<16x32xbf16>
    %c0_16 = arith.constant 0 : index
    %c0_17 = arith.constant 0 : index
    %19 = vector.load %arg6[%c0_16, %c0_17] : memref<32x16xbf16, #tpu.memory_space<vmem>>, vector<32x16xbf16>
    %cst_18 = arith.constant dense<0.000000e+00> : vector<16x16xf32>
    %20 = tpu.matmul %18, %19, %cst_18 {dimension_numbers = #tpu.dot_dimension_numbers<[1], [0], [0], [1], [0, 0, 1, 1], [], []>} : vector<16x32xbf16>, vector<32x16xbf16>, vector<16x16xf32> -> vector<16x16xf32>
    %21 = vector.broadcast %3 : vector<1x16xf32> to vector<16x16xf32>
    %22 = arith.addf %20, %21 : vector<16x16xf32>
    %cst_19 = arith.constant 0.000000e+00 : f32
    %23 = vector.broadcast %cst_19 : f32 to vector<16x16xf32>
    %24 = arith.cmpf oge, %22, %23 : vector<16x16xf32>
    %cst_20 = arith.constant 0.00999999977 : f32
    %25 = vector.broadcast %cst_20 : f32 to vector<16x16xf32>
    %26 = arith.mulf %25, %22 : vector<16x16xf32>
    %27 = arith.select %24, %22, %26 : vector<16x16xi1>, vector<16x16xf32>
    %28 = arith.truncf %27 : vector<16x16xf32> to vector<16x16xbf16>
    %c0_21 = arith.constant 0 : index
    %c0_22 = arith.constant 0 : index
    %29 = vector.load %arg8[%c0_21, %c0_22] : memref<16x128xbf16, #tpu.memory_space<vmem>>, vector<16x128xbf16>
    %cst_23 = arith.constant dense<0.000000e+00> : vector<16x128xf32>
    %30 = tpu.matmul %28, %29, %cst_23 {dimension_numbers = #tpu.dot_dimension_numbers<[1], [0], [0], [1], [0, 0, 1, 1], [], []>} : vector<16x16xbf16>, vector<16x128xbf16>, vector<16x128xf32> -> vector<16x128xf32>
    %31 = vector.broadcast %4 : vector<1x128xf32> to vector<16x128xf32>
    %32 = arith.addf %30, %31 : vector<16x128xf32>
    %cst_24 = arith.constant 0.000000e+00 : f32
    %33 = vector.broadcast %cst_24 : f32 to vector<16x128xf32>
    %34 = arith.subf %33, %32 : vector<16x128xf32>
    %35 = math.exp %34 : vector<16x128xf32>
    %cst_25 = arith.constant 1.000000e+00 : f32
    %36 = vector.broadcast %cst_25 : f32 to vector<16x128xf32>
    %37 = arith.addf %36, %35 : vector<16x128xf32>
    %cst_26 = arith.constant 1.000000e+00 : f32
    %38 = vector.broadcast %cst_26 : f32 to vector<16x128xf32>
    %39 = arith.divf %38, %37 : vector<16x128xf32>
    %c0_27 = arith.constant 0 : index
    %c0_28 = arith.constant 0 : index
    %40 = vector.load %arg10[%c0_27, %c0_28] : memref<16x128xf32, #tpu.memory_space<vmem>>, vector<16x128xf32>
    tpu.vector_store %arg10[%c0_27, %c0_28], %39 {strides = array<i32>} : memref<16x128xf32, #tpu.memory_space<vmem>>, vector<16x128xf32>,
    return
  }
  func.func @transform_0(%arg0: i32) -> (i32, i32) {
    %c0_i32 = arith.constant 0 : i32
    %c0_i32_0 = arith.constant 0 : i32
    return %arg0, %c0_i32 : i32, i32
  }
  func.func @transform_1(%arg0: i32) -> (i32, i32) {
    %c0_i32 = arith.constant 0 : i32
    %c0_i32_0 = arith.constant 0 : i32
    %c0_i32_1 = arith.constant 0 : i32
    return %c0_i32, %c0_i32_0 : i32, i32
  }
  func.func @transform_2(%arg0: i32) -> (i32, i32) {
    %c0_i32 = arith.constant 0 : i32
    %c0_i32_0 = arith.constant 0 : i32
    %c0_i32_1 = arith.constant 0 : i32
    return %c0_i32, %c0_i32_0 : i32, i32
  }
  func.func @transform_3(%arg0: i32) -> (i32, i32) {
    %c0_i32 = arith.constant 0 : i32
    %c0_i32_0 = arith.constant 0 : i32
    %c0_i32_1 = arith.constant 0 : i32
    return %c0_i32, %c0_i32_0 : i32, i32
  }
  func.func @transform_4(%arg0: i32) -> (i32, i32) {
    %c0_i32 = arith.constant 0 : i32
    %c0_i32_0 = arith.constant 0 : i32
    %c0_i32_1 = arith.constant 0 : i32
    return %c0_i32, %c0_i32_0 : i32, i32
  }
  func.func @transform_5(%arg0: i32) -> (i32, i32) {
    %c0_i32 = arith.constant 0 : i32
    %c0_i32_0 = arith.constant 0 : i32
    %c0_i32_1 = arith.constant 0 : i32
    return %c0_i32, %c0_i32_0 : i32, i32
  }
  func.func @transform_6(%arg0: i32) -> (i32, i32) {
    %c0_i32 = arith.constant 0 : i32
    %c0_i32_0 = arith.constant 0 : i32
    %c0_i32_1 = arith.constant 0 : i32
    return %c0_i32, %c0_i32_0 : i32, i32
  }
  func.func @transform_7(%arg0: i32) -> (i32, i32) {
    %c0_i32 = arith.constant 0 : i32
    %c0_i32_0 = arith.constant 0 : i32
    %c0_i32_1 = arith.constant 0 : i32
    return %c0_i32, %c0_i32_0 : i32, i32
  }
  func.func @transform_8(%arg0: i32) -> (i32, i32) {
    %c0_i32 = arith.constant 0 : i32
    %c0_i32_0 = arith.constant 0 : i32
    %c0_i32_1 = arith.constant 0 : i32
    return %c0_i32, %c0_i32_0 : i32, i32
  }
  func.func @transform_9(%arg0: i32) -> (i32, i32) {
    %c0_i32 = arith.constant 0 : i32
    %c0_i32_0 = arith.constant 0 : i32
    return %arg0, %c0_i32 : i32, i32
  }
}

</mosaic_0001>

<bundles_post_ra>
// kernel: tpu_custom_call.1
= control target key start
LH: loop header
LB: loop body
LE: loop exit
PB: predicated region body
PF: predicated region fallthrough
CT: control target
= control target key end

     0   :  { %14 = vsyncpa [#allocation3], 0  ;;  %s981_s0 = inlined_call_operand.vmem [shape: bf16[64,16], index: 0, kind: input, shape index: {}]   ;;  %s982_s1 = inlined_call_operand.vmem [shape: bf16[16,64], index: 1, kind: input, shape index: {}]   ;;  %s983_s2 = inlined_call_operand.vmem [shape: f32[1,64], index: 2, kind: input, shape index: {}]   ;;  %s984_s3 = inlined_call_operand.vmem [shape: bf16[64,32], index: 3, kind: input, shape index: {}]   ;;  %s985_s4 = inlined_call_operand.vmem [shape: f32[1,32], index: 4, kind: input, shape index: {}]   ;;  %s986_s5 = inlined_call_operand.vmem [shape: bf16[32,16], index: 5, kind: input, shape index: {}]   ;;  %s987_s6 = inlined_call_operand.vmem [shape: f32[1,16], index: 6, kind: input, shape index: {}]   ;;  %s988_s7 = inlined_call_operand.vmem [shape: bf16[16,128], index: 7, kind: input, shape index: {}]   ;;  %s989_s8 = inlined_call_operand.vmem [shape: f32[1,128], index: 8, kind: input, shape index: {}]   ;;  %s990_s9 = inlined_call_operand.hbm [shape: f32[64,128], index: 9, kind: output, shape index: {}]  }
   0x1   :  { %16 = vsyncpa [#allocation3 + $0x1], 0  ;;  %s855_s30 = smov 0   ;;  %s857_s10 = smov 0  }
   0x2   :  { %s859_s11 = smov 0   ;;  %s861_s12 = smov 0  }
   0x3 LB: > { %s876_s13 = sadd.s32 4294967295, %s801_s12   ;;  %s624_s14 = sadd.s32 4294967294, %s801_s12   ;;  %s801_s12 = sphi %s861_s12, %s996_s12   ;;  %s797_s11 = sphi %s859_s11, %s995_s11   ;;  %s793_s10 = sphi %s857_s10, %s994_s10   ;;  %s789_s30 = sphi %s855_s30, %s993_s30  }
   0x4   : > { %s880_s15 = sadd.s32 1, %s801_s12   ;;  %s223_s16 = sadd.s32 1, %s797_s11 }
   0x5   : > { %s220_s17 = ssub.s32 %s801_s12, %s880_s15  ;;  %p233_p0 = scmp.ne.s32.totalorder %s797_s11, %s793_s10 }
   0x6   : > { %p221_p1 = scmp.eq.s32.totalorder %s220_s17, 0  ;;  %p234_p2 = scmp.eq.s32.totalorder %s876_s13, 3 }
   0x7   : > { %p239_p3 = scmp.ne.s32.totalorder %s793_s10, %s789_s30  ;;  %p240_p4 = scmp.eq.s32.totalorder %s624_s14, 3 }
   0x8   : > { %s891_s18 = scalar_select %p221_p1, %s797_s11, %s223_s16  }
   0x9   : > { %p893_p5 = por %p234_p2, %p233_p0  ;;  %p897_p6 = por %p240_p4, %p239_p3 }
   0xa   : > { %p627_p7 = scmp.ge.s32.totalorder %s801_s12, 1  ;;  %p291_p8 = scmp.lt.s32.totalorder %s801_s12, 5 }
   0xc   : > { %p292_p9 = pnand %p627_p7, %p291_p8 }
   0xd   : > { %s629_s23 = sshll.u32 (!%p292_p9), %s876_s13, 1  ;;  %s324_s26 = sand.u32 (!%p292_p9), 1, %s793_s10  }
   0xe   : > { %295 = sbr.rel (%p292_p9) target bundleno = 626 (0x272), region = 56  ;;  %p328_p10 = scmp.lt.s32.totalorder (!%p292_p9), %s629_s23, 7 }
   0xf   : > { %s685_s28 = sshll.u32 (!%p292_p9), %s876_s13, 4  ;;  %s547_s22 = scalar_lea.sflag (!%p292_p9), [#allocation3], %s324_s26 }
  0x10   : > { %s558_s16 = scalar_lea.hbm (!%p292_p9), %s990_s9, %s685_s28  ;;  %s759_s28 = scalar_lea.hbm (!%p292_p9), %s990_s9, 64 }
  0x11   : > { %s561_s21 = sshll.u32 (!%p292_p9), %s558_s16, 4  ;;  %s562_s21 = int_to_ptr.hbm [resolvable:$true] %s561_s21 }
  0x13   : > { %v677_v0 = vld [vmem:[%s982_s1] sm:$0xff]  ;;  %s998_s23 = smov (!%p328_p10, %s629_s23), 7  ;;  %vm357_vm0 = vcmask 130048   ;;  %v681_v2 = vld [vmem:[%s984_s3 + $0x18] sm:$0xff]  ;;  %v680_v3 = vld [vmem:[%s984_s3 + $0x10] sm:$0xff]  ;;  %vm413_vm1 = vcmask 523264  }
  0x14   : > { %368 = vmatpush.bf16.msra.mxu0 %v677_v0  ;;  %s630_s24 = sshll.u32 %s998_s23, 2  ;;  %421 = vmatpush.bf16.msra.mxu1 %v681_v2  ;;  %v679_v4 = vld [vmem:[%s984_s3 + $0x8] sm:$0xff]  ;;  %v678_v5 = vld [vmem:[%s984_s3] sm:$0xff]  ;;  %vm453_vm2 = vcmask 261120   ;;  %s753_s23 = sshra.s32 %s562_s21, 4  ;;  %s754_s23 = int_to_ptr.hbm [resolvable:$true] %s753_s23 }
  0x15   : > { %s331_s27 = scalar_lea.vmem %s981_s0, %s630_s24  ;;  %v727_v7 = vld [vmem:[%s983_s2] ss:$0 sm:$0xff]  ;;  %v683_v14 = vld [vmem:[%s986_s5 + $0x8] sm:$0xff]  ;;  %s755_s24 = scalar_lea.hbm %s754_s23, 16 }
  0x16   : > { %v676_v1 = vld [vmem:[%s331_s27] sm:$0xff]  ;;  %463 = vmatpush.bf16.msra.mxu2 %v683_v14  ;;  %s628_s27 = sshll.u32 %s324_s26, 4  ;;  %p756_p11 = scmp.ne.s32.totalorder %s754_s23, %s755_s24 }
  0x17   : > { %639 = vmatmul.msk.bf16.vlgmr.msra.gmra.mxu0 %vm357_vm0, %v676_v1  ;;  %v682_v15 = vld [vmem:[%s986_s5] sm:$0xff]  ;;  %s326_s17 = scalar_lea.vmem [#allocation2], %s628_s27  ;;  %p760_p0 = scmp.lt.s32.totalorder %s754_s23, %s990_s9 }
  0x18   : > { %422 = vmatpush.bf16.msra.mxu1 %v680_v3  ;;  %v728_v17 = vld [vmem:[%s985_s4] ss:$0 sm:$0xff]  ;;  %s559_s13 = sshll.u32 %s326_s17, 4  ;;  %p757_p12 = pnand %p756_p11, %p893_p5  ;;  %s560_s13 = int_to_ptr.vmem [resolvable:$true] %s559_s13 }
  0x19   : > { %v684_v24 = vld [vmem:[%s988_s7] sm:$0xff]  ;;  %p761_p1 = scmp.lt.s32.totalorder %s759_s28, %s755_s24 }
  0x1a   : > { %464 = vmatpush.bf16.msra.mxu2 %v682_v15  ;;  %499 = vmatpush.bf16.msra.mxu3 %v684_v24  ;;  %v729_v26 = vld [vmem:[%s987_s6] ss:$0 sm:$0xff]  ;;  %p758_p13 = pneg %p757_p12 }
  0x1b   : > { %v730_v35 = vld [vmem:[%s989_s8] ss:$0 sm:$0xff]  ;;  %p762_p2 = por %p761_p1, %p760_p0 }
  0x1c   : > { %423 = vmatpush.bf16.msra.mxu1 %v679_v4 }
  0x1d   : > { %p763_p3 = pnand %p762_p2, %p758_p13 }
  0x20   : > { %424 = vmatpush.bf16.msra.mxu1 %v678_v5 }
  0x94   : > { %v370_v6 = vpop.f32.mrf.mxu0 }
  0x95   : > { %v371_v8 = vadd.f32 %v727_v7, %v370_v6 }
  0x97   : > { %v375_v11 = vmax.f32 %v371_v8, 0.0 }
  0x9c   : > { %v372_v9 = vpop.f32.mrf.mxu0 }
  0x9d   : > { %v373_v10 = vadd.f32 %v727_v7, %v372_v9 }
  0x9f   : > { %v376_v12 = vmax.f32 %v373_v10, 0.0 }
  0xa1   : > { %v377_v13 = vpack.c.bf16 %v376_v12, %v375_v11 }
  0xa3   : > { %656 = vmatmul.msk.bf16.vlgmr.msra.gmra.mxu1 %vm413_vm1, %v377_v13 }
 0x120   : > { %v426_v16 = vpop.f32.mrf.mxu1 }
 0x121   : > { %v427_v18 = vadd.f32 %v728_v17, %v426_v16 }
 0x123   : > { %v431_v21 = vmax.f32 %v427_v18, 0.0 }
 0x128   : > { %v428_v19 = vpop.f32.mrf.mxu1 }
 0x129   : > { %v429_v20 = vadd.f32 %v728_v17, %v428_v19 }
 0x12b   : > { %v432_v22 = vmax.f32 %v429_v20, 0.0 }
 0x12d   : > { %v433_v23 = vpack.c.bf16 %v432_v22, %v431_v21 }
 0x12f   : > { %665 = vmatmul.msk.bf16.vlgmr.msra.gmra.mxu2 %vm453_vm2, %v433_v23 }
 0x1b2   : > { %v466_v25 = vpop.f32.mrf.mxu2 }
 0x1b3   : > { %v467_v27 = vadd.f32 %v729_v26, %v466_v25 }
 0x1b5   : > { %v473_v29 = vmul.f32 0.01, %v467_v27  ;;  %vm471_vm3 = vcmp.ge.f32.partialorder %v467_v27, 0.0 }
 0x1b7   : > { %v475_v32 = vsel %vm471_vm3, %v467_v27, %v473_v29 }
 0x1ba   : > { %v468_v28 = vpop.f32.mrf.mxu2 }
 0x1bb   : > { %v469_v30 = vadd.f32 %v729_v26, %v468_v28 }
 0x1bd   : > { %vm472_vm4 = vcmp.ge.f32.partialorder %v469_v30, 0.0  ;;  %v474_v31 = vmul.f32 0.01, %v469_v30 }
 0x1bf   : > { %v476_v33 = vsel %vm472_vm4, %v469_v30, %v474_v31 }
 0x1c0   : > { %v477_v34 = vpack.c.bf16 %v476_v33, %v475_v32 }
 0x1c2   : > { %670 = vmatmul.msk.bf16.vlgmr.msra.gmra.mxu3 %vm357_vm0, %v477_v34 }
 0x245   : > { %v501_v36 = vpop.f32.mrf.mxu3 }
 0x246   : > { %v502_v37 = vadd.f32 %v730_v35, %v501_v36 }
 0x248   : > { %v506_v38 = vsub.f32 0.0, %v502_v37 }
 0x24a   : > { %v508_v39 = vmul.f32 1.442695, %v506_v38 }
 0x24c   : > { %731 = vpow2.f32 %v508_v39 }
 0x24d   : > { %v503_v40 = vpop.f32.mrf.mxu3 }
 0x24e   : > { %v504_v41 = vadd.f32 %v730_v35, %v503_v40 }
 0x250   : > { %v507_v42 = vsub.f32 0.0, %v504_v41 }
 0x252   : > { %v732_v43 = vpop.eup %731  ;;  %v510_v44 = vmul.f32 1.442695, %v507_v42 }
 0x253   : > { %v512_v45 = vadd.f32 1.0, %v732_v43 }
 0x254   : > { %733 = vpow2.f32 %v510_v44 }
 0x255   : > { %735 = vrcp.f32 %v512_v45  ;;  %v525_v51 = vand.u32 2147483648, %v512_v45  ;;  %v523_v53 = vand.u32 2147483647, %v512_v45  ;;  %vm519_vm6 = vweird.f32 %v512_v45 }
 0x257   : > { %v526_v56 = vor.u32 1.1754944e-38, %v525_v51  ;;  %vm524_vm8 = vcmp.eq.f32.partialorder %v523_v53, 8.507059e+37 }
 0x25a   : > { %v734_v46 = vpop.eup %733 }
 0x25b   : > { %v736_v47 = vpop.eup %735  ;;  %v513_v48 = vadd.f32 1.0, %v734_v46 }
 0x25c   : > { %v515_v49 = vmul.f32 %v736_v47, %v512_v45  ;;  %vm520_vm5 = vweird.f32 %v736_v47 }
 0x25d   : > { %737 = vrcp.f32 %v513_v48  ;;  %vm521_vm7 = vmor %vm519_vm6, %vm520_vm5  ;;  %v540_v61 = vand.u32 2147483648, %v513_v48  ;;  %v538_v63 = vand.u32 2147483647, %v513_v48  ;;  %vm534_vm10 = vweird.f32 %v513_v48 }
 0x25e   : > { %v516_v50 = vsub.f32 1.0, %v515_v49 }
 0x25f   : > { %v541_v1 = vor.u32 1.1754944e-38, %v540_v61  ;;  %vm539_vm12 = vcmp.eq.f32.partialorder %v538_v63, 8.507059e+37 }
 0x260   : > { %v517_v52 = vmul.f32 %v736_v47, %v516_v50 }
 0x262   : > { %v518_v54 = vadd.f32 %v736_v47, %v517_v52 }
 0x263   : > { %v738_v55 = vpop.eup %737 }
 0x264   : > { %v530_v57 = vmul.f32 %v738_v55, %v513_v48  ;;  %v522_v58 = vsel %vm521_vm7, %v736_v47, %v518_v54  ;;  %vm535_vm9 = vweird.f32 %v738_v55 }
 0x265   : > { %v527_v59 = vsel %vm524_vm8, %v526_v56, %v522_v58  ;;  %vm536_vm11 = vmor %vm534_vm10, %vm535_vm9 }
 0x266   : > { %v531_v60 = vsub.f32 1.0, %v530_v57  ;;  %544 = vst [vmem:[%s326_s17] sm:$0xff] %v527_v59 }
 0x268   : > { %v532_v62 = vmul.f32 %v738_v55, %v531_v60 }
 0x26a   : > { %v533_v0 = vadd.f32 %v738_v55, %v532_v62 }
 0x26c   : > { %v537_v2 = vsel %vm536_vm11, %v738_v55, %v533_v0 }
 0x26d   : > { %v542_v3 = vsel %vm539_vm12, %v541_v1, %v537_v2 }
 0x26e   : > { %545 = vst [vmem:[%s326_s17 + $0x8] sm:$0xff] %v542_v3 }
 0x26f   : > { %766 = shalt.err (!%p763_p3)
}
 0x270   : > { %s803_s26 = smov 128   ;;  %s804_s16 = smov 8  }
 0x271   : > { %686 = dma.vmem_to_hbm [thread:$0]  (%p893_p5), %s560_s13, 256, %s562_s21, %s547_s22, %s803_s26, %s803_s26, %s804_s16  }
 0x272 PF: > { %p692_p4 = scmp.ge.s32.totalorder %s801_s12, 2  ;;  %s576_s17 = sand.u32 1, %s789_s30  }
 0x273   : > { %s577_s25 = scalar_lea.sflag [#allocation3], %s576_s17 }
 0x274   : > { %p689_p7 = pnand %p692_p4, %p897_p6 }
 0x276   : > { %p690_p8 = pneg %p689_p7 }
 0x278   : > { %784 = dma.done.wait (%p690_p8), %s577_s25, 256  }
 0x279   : > { %786 = vsyncadd (%p690_p8), %s577_s25, 4294967040  ;;  %p19_p9 = scmp.ge.s32.totalorder %s880_s15, 6   ;;  %s993_s30 = smov %s793_s10 }
 0x27a   : > { %s994_s10 = smov %s797_s11  ;;  %s995_s11 = smov %s891_s18 }
 0x27b   : > { %s996_s12 = smov %s880_s15  ;;  %21 = sbr.rel (!%p19_p9) target bundleno = 3 (0x3), region = 91 }
 0x280   :  { %583 = vsyncpa [#allocation3], 1 }
 0x281   :  { %585 = vsyncpa [#allocation3 + $0x1], 1 }

</bundles_post_ra>
